<compile_context>
chip_gen: v7x
topology: tpu7x:2x2x1
jax: 0.10.0
libtpu: 0.0.40
codegen_flags: <defaults>
</compile_context>

<pallas_src>
import jax
import jax.numpy as jnp
from jax import lax
from jax.experimental import pallas as pl
from jax.experimental.pallas import tpu as pltpu

EPS = 1e-5   # PyTorch InstanceNorm3d default eps


def _vmem_capacity_bytes(default=64 * 1024 * 1024):
    """Physical VMEM per TensorCore; conservative fallback if the query fails."""
    try:
        cap = getattr(pltpu.get_tpu_info(), "vmem_capacity_bytes", None)
        if cap:
            return int(cap)
    except Exception:
        pass
    return default


def fast_smooth_se_norm_conv3d(x, params, *,
                               stream_dtype=None,     # e.g. jnp.bfloat16: halve the x read stream
                               out_dtype=None,        # e.g. jnp.bfloat16: halve the output write stream
                               cache_y=None,          # None = auto (on for 128-MiB-VMEM chips when it fits)
                               spatial_tile=None,     # force the spatial tile (multiple of 128)
                               vmem_limit_bytes=None):
    """x: [B, Cin, D, H, W] (PyTorch NCDHW).  The Conv3d has kernel_size=1."""
    B, Cin, D, H, W = x.shape
    S = D * H * W
    Cout, cin_w = params["wc"].shape
    assert cin_w == Cin, "conv weight / input channel mismatch"
    Cmid = params["g1_w"].shape[0]

    out_dtype = jnp.dtype(out_dtype if out_dtype is not None else x.dtype)
    xs_dtype = jnp.dtype(stream_dtype if stream_dtype is not None else x.dtype)
    x_bytes, o_bytes = xs_dtype.itemsize, out_dtype.itemsize

    # ---- generation-aware VMEM budget (v5e/v6e: 128 MiB, v7x: 64 MiB) -------
    vmem_cap = _vmem_capacity_bytes()
    if vmem_limit_bytes is None:
        vmem_limit_bytes = min(vmem_cap * 3 // 4, 112 * 1024 * 1024)

    s_128 = -(-S // 128) * 128
    y_cache_bytes = Cout * s_128 * 4
    if cache_y is None:
        # Caching y removes the second HBM read of x (pass-1 recompute).  Only
        # auto-enable on 128-MiB-VMEM chips (v5e/v6e); keep recompute on v7x.
        cache_y = (vmem_cap >= 96 * 1024 * 1024 and
                   y_cache_bytes <= vmem_limit_bytes - 24 * 1024 * 1024)
    cache_y = bool(cache_y)

    # ---- spatial tile size (lane-dense, multiple of 128) --------------------
    if spatial_tile is not None:
        TS = min(max(128, int(spatial_tile) // 128 * 128), s_128)
        T = -(-s_128 // TS)
    else:
        budget = vmem_limit_bytes - (y_cache_bytes if cache_y else 0) - 4 * 1024 * 1024
        # per step: double-buffered x + out tiles plus ~4 f32 [Cout, TS] temps
        denom = 2 * Cin * x_bytes + 2 * Cout * o_bytes + 4 * Cout * 4
        ts_cap = max(128, max(budget, 0) // denom // 128 * 128)
        TS = min(ts_cap, s_128)
        T = -(-s_128 // TS)
        TS = -(-(s_128 // 128) // T) * 128      # rebalance tiles, minimal padding
        T = -(-s_128 // TS)
    S_pad = T * TS

    # ---- input layout: [B, Cin, S_pad] ---------------------------------------
    x2 = x.reshape(B, Cin, S)
    if S_pad != S:
        x2 = jnp.pad(x2, ((0, 0), (0, 0), (0, S_pad - S)))   # zero pad (exact)
    if x2.dtype != xs_dtype:
        x2 = x2.astype(xs_dtype)

    # ---- pack ALL parameters into one small f32 array ------------------------
    f32 = lambda a: jnp.asarray(a, jnp.float32)
    wc_h, bc_h = f32(params["wc"]), f32(params["bc"])
    g1w, g1b = f32(params["g1_w"]), f32(params["g1_b"])
    g2w, g2b = f32(params["g2_w"]), f32(params["g2_b"])
    b1w, b1b = f32(params["b1_w"]), f32(params["b1_b"])
    b2w, b2b = f32(params["b2_w"]), f32(params["b2_b"])

    top = jnp.concatenate([
        wc_h,                 # [Cout, Cin]   conv weight
        bc_h[:, None],        # [Cout, 1]     conv bias
        g1w.T,                # [Cout, Cmid]  gamma FC1^T
        g2w,                  # [Cout, Cmid]  gamma FC2
        g2b[:, None],         # [Cout, 1]
        b1w.T,                # [Cout, Cmid]  beta FC1^T
        b2w,                  # [Cout, Cmid]  beta FC2
        b2b[:, None],         # [Cout, 1]
    ], axis=1)
    # extra row: the two SE-FC1 biases live under their FC1^T column blocks
    bot = jnp.concatenate([
        jnp.zeros((1, Cin + 1), jnp.float32),
        g1b[None, :],
        jnp.zeros((1, Cmid + 1), jnp.float32),
        b1b[None, :],
        jnp.zeros((1, Cmid + 1), jnp.float32),
    ], axis=1)
    pcol = jnp.concatenate([top, bot], axis=0)     # [Cout + 1, PC]
    PC = pcol.shape[1]

    # static column offsets into pcol
    c0 = 0
    c1 = c0 + Cin          # conv weight
    c2 = c1 + 1            # conv bias
    c3 = c2 + Cmid         # gamma FC1^T (bias in row Cout)
    c4 = c3 + Cmid         # gamma FC2
    c5 = c4 + 1            # gamma FC2 bias
    c6 = c5 + Cmid         # beta FC1^T (bias in row Cout)
    c7 = c6 + Cmid         # beta FC2
    c8 = c7 + 1            # beta FC2 bias
    assert c8 == PC

    # MXU whenever the matmul is non-trivial; an under-filled MXU matmul sits in
    # the (otherwise idle) vmatmul slot of this HBM-bound kernel.
    use_mxu = (Cin >= 8) or (Cin * Cout >= 128)

    def kernel(x_ref, p_ref, o_ref, sum_ref, sq_ref, scale_ref, shift_ref,
               *y_scratch):
        y_ref = y_scratch[0] if cache_y else None
        p = pl.program_id(1)       # 0 = stats pass, 1 = normalize pass
        t = pl.program_id(2)       # spatial tile index

        P = p_ref[...]                       # [Cout + 1, PC] packed params (f32)
        wc = P[:Cout, c0:c1]                 # [Cout, Cin]
        bc = P[:Cout, c1:c2]                 # [Cout, 1]

        def conv_relu():
            xt = x_ref[0]                    # [Cin, TS]
            if use_mxu:
                if xt.dtype == jnp.float32:
                    y = jnp.dot(wc, xt, preferred_element_type=jnp.float32,
                                precision=lax.Precision.HIGHEST)
                else:
                    # native low-precision MXU path (bf16 streaming); f32 acc
                    y = jnp.dot(wc.astype(xt.dtype), xt,
                                preferred_element_type=jnp.float32)
            else:
                # truly tiny channel counts: unrolled VPU accumulate
                xt = xt.astype(jnp.float32)
                y = wc[:, 0:1] * xt[0:1, :]
                for c in range(1, Cin):
                    y = y + wc[:, c:c + 1] * xt[c:c + 1, :]
            return jnp.maximum(y + bc, 0.0)  # [Cout, TS] f32

        # ---- pass 0: accumulate per-channel sum / sumsq ----------------------
        @pl.when(p == 0)
        def _stats():
            @pl.when(t == 0)
            def _init():
                sum_ref[...] = jnp.zeros_like(sum_ref)
                sq_ref[...] = jnp.zeros_like(sq_ref)

            y = conv_relu()
            if cache_y:
                off = pl.multiple_of(t * TS, 128)
                y_ref[:, pl.ds(off, TS)] = y
            # padded lanes contribute exactly relu(bc); corrected at finalize
            sum_ref[...] += jnp.sum(y, axis=-1, keepdims=True)
            sq_ref[...] += jnp.sum(y * y, axis=-1, keepdims=True)

        # ---- pass 1: finalize once, then fused scale*y + shift per tile ------
        @pl.when(p == 1)
        def _normalize():
            @pl.when(t == 0)
            def _finalize():
                ssum = sum_ref[...]
                ssq = sq_ref[...]
                if S_pad != S:
                    # analytic padding correction: padded x lanes are exactly 0
                    # so their conv+ReLU value is exactly relu(bc) per channel.
                    ybc = jnp.maximum(bc, 0.0)
                    npad = jnp.float32(S_pad - S)
                    ssum = ssum - ybc * npad
                    ssq = ssq - ybc * ybc * npad
                inv_n = jnp.float32(1.0 / S)
                m = ssum * inv_n                                   # [Cout, 1]
                var = jnp.maximum(ssq * inv_n - m * m, 0.0)        # biased var
                rstd = lax.rsqrt(var + EPS)

                wg1t = P[:Cout, c2:c3]
                bg1 = P[Cout:Cout + 1, c2:c3]                      # [1, Cmid]
                wg2 = P[:Cout, c3:c4]
                bg2 = P[:Cout, c4:c5]
                wb1t = P[:Cout, c5:c6]
                bb1 = P[Cout:Cout + 1, c5:c6]
                wb2 = P[:Cout, c6:c7]
                bb2 = P[:Cout, c7:c8]

                def se(w1t, b1, w2, b2):
                    # FC1 (transposed weights): sublane reduce -> [1, Cmid]
                    h = jnp.maximum(
                        jnp.sum(w1t * m, axis=0, keepdims=True) + b1, 0.0)
                    # FC2: lane reduce -> [Cout, 1]
                    return jnp.sum(w2 * h, axis=-1, keepdims=True) + b2

                gamma = jax.nn.sigmoid(se(wg1t, bg1, wg2, bg2))
                beta = jnp.tanh(se(wb1t, bb1, wb2, bb2))
                # out = gamma*(y - m)*rstd + beta  ==  scale*y + shift
                scale_ref[...] = gamma * rstd
                shift_ref[...] = beta - gamma * rstd * m

            if cache_y:
                off = pl.multiple_of(t * TS, 128)
                y = y_ref[:, pl.ds(off, TS)]
            else:
                y = conv_relu()
            o_ref[0] = (scale_ref[...] * y + shift_ref[...]).astype(o_ref.dtype)

    if cache_y:
        # pass 1 does not need x: park its x window on tile 0 (one extra tile
        # read per batch instead of a full re-read of x).
        x_map = lambda b, p, t: (b, 0, t * (1 - p))
    else:
        x_map = lambda b, p, t: (b, 0, t)

    scratch = [
        pltpu.VMEM((Cout, 1), jnp.float32),   # per-channel sum
        pltpu.VMEM((Cout, 1), jnp.float32),   # per-channel sum of squares
        pltpu.VMEM((Cout, 1), jnp.float32),   # fused scale = gamma * rstd
        pltpu.VMEM((Cout, 1), jnp.float32),   # fused shift = beta - scale*mean
    ]
    if cache_y:
        scratch.append(pltpu.VMEM((Cout, S_pad), jnp.float32))   # conv+ReLU cache

    out = pl.pallas_call(
        kernel,
        out_shape=jax.ShapeDtypeStruct((B, Cout, S_pad), out_dtype),
        grid=(B, 2, T),
        in_specs=[
            pl.BlockSpec((1, Cin, TS), x_map),                     # x tile
            pl.BlockSpec((Cout + 1, PC), lambda b, p, t: (0, 0)),  # packed params
        ],
        # pass 0 parks on tile 0 (never written), pass 1 sweeps the tiles; each
        # output tile is flushed exactly once (writeback on block-index change).
        out_specs=pl.BlockSpec((1, Cout, TS), lambda b, p, t: (b, 0, t * p)),
        scratch_shapes=scratch,
        compiler_params=pltpu.CompilerParams(
            dimension_semantics=("parallel", "arbitrary", "arbitrary"),
            vmem_limit_bytes=int(vmem_limit_bytes),
        ),
    )(x2, pcol)

    if S_pad != S:
        out = out[:, :, :S]
    return out.reshape(B, Cout, D, H, W)


# ----------------------------------------------------------------------------
# Pure-JAX reference of the PyTorch forward (explicit f32 sums, no MXU).
# ----------------------------------------------------------------------------
def reference(x, p):
    y = jnp.sum(p["wc"][None, :, :, None, None, None] * x[:, None], axis=2)
    y = y + p["bc"][None, :, None, None, None]
    y = jnp.maximum(y, 0.0)
    m = y.mean(axis=(2, 3, 4), keepdims=True)
    var = y.var(axis=(2, 3, 4), keepdims=True)       # biased, like InstanceNorm3d
    mv = m[:, :, 0, 0, 0]                            # [B, Cout]

    def se(w1, b1, w2, b2):
        h = jnp.maximum(jnp.sum(mv[:, None, :] * w1[None, :, :], axis=-1) + b1, 0.0)
        return jnp.sum(h[:, None, :] * w2[None, :, :], axis=-1) + b2

    gamma = jax.nn.sigmoid(se(p["g1_w"], p["g1_b"], p["g2_w"], p["g2_b"]))
    beta = jnp.tanh(se(p["b1_w"], p["b1_b"], p["b2_w"], p["b2_b"]))
    gamma = gamma[:, :, None, None, None]
    beta = beta[:, :, None, None, None]
    return gamma * (y - m) / jnp.sqrt(var + EPS) + beta


def make_params(key, *, cin, cout, reduction):
    cmid = cout // reduction
    ks = jax.random.split(key, 10)
    n = lambda k, shape: jax.random.normal(k, shape, jnp.float32) * 0.1
    return {
        "wc":   n(ks[0], (cout, cin)),     # Conv3d(k=1) weight [Cout, Cin]
        "bc":   n(ks[1], (cout,)),
        "g1_w": n(ks[2], (cmid, cout)),    # gamma SE conv1
        "g1_b": n(ks[3], (cmid,)),
        "g2_w": n(ks[4], (cout, cmid)),    # gamma SE conv2
        "g2_b": n(ks[5], (cout,)),
        "b1_w": n(ks[6], (cmid, cout)),    # beta SE conv1
        "b1_b": n(ks[7], (cmid,)),
        "b2_w": n(ks[8], (cout, cmid)),    # beta SE conv2
        "b2_b": n(ks[9], (cout,)),
    }


if __name__ == "__main__":
    key = jax.random.PRNGKey(0)
    kp1, kx1, kp2, kx2 = jax.random.split(key, 4)

    # Case 1: tiny channels (unrolled VPU conv), odd spatial volume (analytic
    # padding correction), forced multi-tile sweep, recompute path (no y-cache).
    p1 = make_params(kp1, cin=4, cout=8, reduction=2)
    xa = jax.random.normal(kx1, (2, 4, 6, 7, 8), jnp.float32)
    o1 = jax.block_until_ready(
        fast_smooth_se_norm_conv3d(xa, p1, cache_y=False, spatial_tile=128))
    r1 = reference(xa, p1)
    assert o1.shape == r1.shape
    e1 = float(jnp.max(jnp.abs(o1 - r1)))
    assert jnp.allclose(o1, r1, atol=1e-4, rtol=1e-4), f"case1 max err {e1}"

    # Case 2: 32-channel MXU conv path + VMEM y-cache (pass 1 reads the cached
    # conv+ReLU instead of re-reading x), forced multi-tile sweep.
    p2 = make_params(kp2, cin=32, cout=32, reduction=4)
    xb = jax.random.normal(kx2, (1, 32, 8, 8, 8), jnp.float32)
    o2 = jax.block_until_ready(
        fast_smooth_se_norm_conv3d(xb, p2, cache_y=True, spatial_tile=128))
    r2 = reference(xb, p2)
    e2 = float(jnp.max(jnp.abs(o2 - r2)))
    # MXU f32 matmul (HIGHEST precision requested) vs. explicit-sum reference.
    assert jnp.allclose(o2, r2, atol=1e-3, rtol=1e-3), f"case2 max err {e2}"

    # Case 3: bf16 streaming of x + bf16 output (halves the dominant HBM
    # streams); auto tiling / auto y-cache.  Looser tolerance (bf16 quantization).
    o3 = jax.block_until_ready(
        fast_smooth_se_norm_conv3d(xb, p2, stream_dtype=jnp.bfloat16,
                                   out_dtype=jnp.bfloat16))
    assert o3.dtype == jnp.bfloat16
    e3 = float(jnp.max(jnp.abs(o3.astype(jnp.float32) - r2)))
    assert e3 < 5e-2, f"case3 max err {e3}"

    print("KERNEL_OK")
</pallas_src>

<mosaic_0001>
module attributes {stable_mosaic.version = 11 : i64} {
  func.func @kernel(%arg0: i32, %arg1: i32, %arg2: i32, %arg3: memref<1x4x128xf32, #tpu.memory_space<vmem>>, %arg4: memref<9x23xf32, #tpu.memory_space<vmem>>, %arg5: memref<1x8x128xf32, #tpu.memory_space<vmem>>, %arg6: memref<8x1xf32, #tpu.memory_space<vmem>>, %arg7: memref<8x1xf32, #tpu.memory_space<vmem>>, %arg8: memref<8x1xf32, #tpu.memory_space<vmem>>, %arg9: memref<8x1xf32, #tpu.memory_space<vmem>>) attributes {dimension_semantics = [#tpu.dimension_semantics<parallel>, #tpu.dimension_semantics<arbitrary>, #tpu.dimension_semantics<arbitrary>], iteration_bounds = array<i64: 2, 2, 3>, scalar_prefetch = 0 : i64, scratch_operands = 4 : i64, tpu.core_type = #tpu.core_type<tc>, window_params = [{transform_indices = @transform_0, window_bounds = array<i64: 1, 4, 128>}, {pipeline_mode = #tpu.pipeline_mode<synchronous>, transform_indices = @transform_1, window_bounds = array<i64: 9, 23>}, {transform_indices = @transform_2, window_bounds = array<i64: 1, 8, 128>}]} {
    %c0 = arith.constant 0 : index
    %c0_0 = arith.constant 0 : index
    %0 = vector.load %arg4[%c0, %c0_0] : memref<9x23xf32, #tpu.memory_space<vmem>>, vector<9x23xf32>
    %1 = vector.extract_strided_slice %0 {offsets = [0, 0], sizes = [8, 4], strides = [1, 1]} : vector<9x23xf32> to vector<8x4xf32>
    %2 = vector.extract_strided_slice %0 {offsets = [0, 4], sizes = [8, 1], strides = [1, 1]} : vector<9x23xf32> to vector<8x1xf32>
    %c0_i32 = arith.constant 0 : i32
    %3 = arith.cmpi eq, %arg1, %c0_i32 : i32
    %4 = arith.extui %3 : i1 to i32
    %c0_i32_1 = arith.constant 0 : i32
    %5 = arith.cmpi ne, %4, %c0_i32_1 : i32
    scf.if %5 {
      %c0_i32_3 = arith.constant 0 : i32
      %9 = arith.cmpi eq, %arg2, %c0_i32_3 : i32
      %10 = arith.extui %9 : i1 to i32
      %c0_i32_4 = arith.constant 0 : i32
      %11 = arith.cmpi ne, %10, %c0_i32_4 : i32
      scf.if %11 {
        %cst_18 = arith.constant 0.000000e+00 : f32
        %52 = vector.broadcast %cst_18 : f32 to vector<8x1xf32>
        %c0_19 = arith.constant 0 : index
        %c0_20 = arith.constant 0 : index
        %53 = vector.load %arg6[%c0_19, %c0_20] : memref<8x1xf32, #tpu.memory_space<vmem>>, vector<8x1xf32>
        tpu.vector_store %arg6[%c0_19, %c0_20], %52 {strides = array<i32>} : memref<8x1xf32, #tpu.memory_space<vmem>>, vector<8x1xf32>,
        %cst_21 = arith.constant 0.000000e+00 : f32
        %54 = vector.broadcast %cst_21 : f32 to vector<8x1xf32>
        %c0_22 = arith.constant 0 : index
        %c0_23 = arith.constant 0 : index
        %55 = vector.load %arg7[%c0_22, %c0_23] : memref<8x1xf32, #tpu.memory_space<vmem>>, vector<8x1xf32>
        tpu.vector_store %arg7[%c0_22, %c0_23], %54 {strides = array<i32>} : memref<8x1xf32, #tpu.memory_space<vmem>>, vector<8x1xf32>,
      } else {
      }
      %c0_5 = arith.constant 0 : index
      %c0_6 = arith.constant 0 : index
      %c0_7 = arith.constant 0 : index
      %12 = vector.load %arg3[%c0_5, %c0_6, %c0_7] : memref<1x4x128xf32, #tpu.memory_space<vmem>>, vector<1x4x128xf32>
      %13 = vector.shape_cast %12 : vector<1x4x128xf32> to vector<4x128xf32>
      %14 = vector.extract_strided_slice %1 {offsets = [0, 0], sizes = [8, 1], strides = [1, 1]} : vector<8x4xf32> to vector<8x1xf32>
      %15 = vector.extract_strided_slice %13 {offsets = [0, 0], sizes = [1, 128], strides = [1, 1]} : vector<4x128xf32> to vector<1x128xf32>
      %16 = vector.broadcast %14 : vector<8x1xf32> to vector<8x128xf32>
      %17 = vector.broadcast %15 : vector<1x128xf32> to vector<8x128xf32>
      %18 = arith.mulf %16, %17 : vector<8x128xf32>
      %19 = vector.extract_strided_slice %1 {offsets = [0, 1], sizes = [8, 1], strides = [1, 1]} : vector<8x4xf32> to vector<8x1xf32>
      %20 = vector.extract_strided_slice %13 {offsets = [1, 0], sizes = [1, 128], strides = [1, 1]} : vector<4x128xf32> to vector<1x128xf32>
      %21 = vector.broadcast %19 : vector<8x1xf32> to vector<8x128xf32>
      %22 = vector.broadcast %20 : vector<1x128xf32> to vector<8x128xf32>
      %23 = arith.mulf %21, %22 : vector<8x128xf32>
      %24 = arith.addf %18, %23 : vector<8x128xf32>
      %25 = vector.extract_strided_slice %1 {offsets = [0, 2], sizes = [8, 1], strides = [1, 1]} : vector<8x4xf32> to vector<8x1xf32>
      %26 = vector.extract_strided_slice %13 {offsets = [2, 0], sizes = [1, 128], strides = [1, 1]} : vector<4x128xf32> to vector<1x128xf32>
      %27 = vector.broadcast %25 : vector<8x1xf32> to vector<8x128xf32>
      %28 = vector.broadcast %26 : vector<1x128xf32> to vector<8x128xf32>
      %29 = arith.mulf %27, %28 : vector<8x128xf32>
      %30 = arith.addf %24, %29 : vector<8x128xf32>
      %31 = vector.extract_strided_slice %1 {offsets = [0, 3], sizes = [8, 1], strides = [1, 1]} : vector<8x4xf32> to vector<8x1xf32>
      %32 = vector.extract_strided_slice %13 {offsets = [3, 0], sizes = [1, 128], strides = [1, 1]} : vector<4x128xf32> to vector<1x128xf32>
      %33 = vector.broadcast %31 : vector<8x1xf32> to vector<8x128xf32>
      %34 = vector.broadcast %32 : vector<1x128xf32> to vector<8x128xf32>
      %35 = arith.mulf %33, %34 : vector<8x128xf32>
      %36 = arith.addf %30, %35 : vector<8x128xf32>
      %37 = vector.broadcast %2 : vector<8x1xf32> to vector<8x128xf32>
      %38 = arith.addf %36, %37 : vector<8x128xf32>
      %cst = arith.constant 0.000000e+00 : f32
      %39 = vector.broadcast %cst : f32 to vector<8x128xf32>
      %40 = arith.maximumf %38, %39 : vector<8x128xf32>
      %c0_8 = arith.constant 0 : index
      %c0_9 = arith.constant 0 : index
      %41 = vector.load %arg6[%c0_8, %c0_9] : memref<8x1xf32, #tpu.memory_space<vmem>>, vector<8x1xf32>
      %cst_10 = arith.constant dense<0.000000e+00> : vector<8xf32>
      %42 = vector.multi_reduction <add>, %40, %cst_10 [1] : vector<8x128xf32> to vector<8xf32>
      %43 = vector.shape_cast %42 : vector<8xf32> to vector<8x1xf32>
      %44 = arith.addf %41, %43 : vector<8x1xf32>
      %c0_11 = arith.constant 0 : index
      %c0_12 = arith.constant 0 : index
      %45 = vector.load %arg6[%c0_11, %c0_12] : memref<8x1xf32, #tpu.memory_space<vmem>>, vector<8x1xf32>
      tpu.vector_store %arg6[%c0_11, %c0_12], %44 {strides = array<i32>} : memref<8x1xf32, #tpu.memory_space<vmem>>, vector<8x1xf32>,
      %c0_13 = arith.constant 0 : index
      %c0_14 = arith.constant 0 : index
      %46 = vector.load %arg7[%c0_13, %c0_14] : memref<8x1xf32, #tpu.memory_space<vmem>>, vector<8x1xf32>
      %47 = arith.mulf %40, %40 : vector<8x128xf32>
      %cst_15 = arith.constant dense<0.000000e+00> : vector<8xf32>
      %48 = vector.multi_reduction <add>, %47, %cst_15 [1] : vector<8x128xf32> to vector<8xf32>
      %49 = vector.shape_cast %48 : vector<8xf32> to vector<8x1xf32>
      %50 = arith.addf %46, %49 : vector<8x1xf32>
      %c0_16 = arith.constant 0 : index
      %c0_17 = arith.constant 0 : index
      %51 = vector.load %arg7[%c0_16, %c0_17] : memref<8x1xf32, #tpu.memory_space<vmem>>, vector<8x1xf32>
      tpu.vector_store %arg7[%c0_16, %c0_17], %50 {strides = array<i32>} : memref<8x1xf32, #tpu.memory_space<vmem>>, vector<8x1xf32>,
    } else {
    }
    %c1_i32 = arith.constant 1 : i32
    %6 = arith.cmpi eq, %arg1, %c1_i32 : i32
    %7 = arith.extui %6 : i1 to i32
    %c0_i32_2 = arith.constant 0 : i32
    %8 = arith.cmpi ne, %7, %c0_i32_2 : i32
    scf.if %8 {
      %c0_i32_3 = arith.constant 0 : i32
      %9 = arith.cmpi eq, %arg2, %c0_i32_3 : i32
      %10 = arith.extui %9 : i1 to i32
      %c0_i32_4 = arith.constant 0 : i32
      %11 = arith.cmpi ne, %10, %c0_i32_4 : i32
      scf.if %11 {
        %c0_15 = arith.constant 0 : index
        %c0_16 = arith.constant 0 : index
        %50 = vector.load %arg6[%c0_15, %c0_16] : memref<8x1xf32, #tpu.memory_space<vmem>>, vector<8x1xf32>
        %c0_17 = arith.constant 0 : index
        %c0_18 = arith.constant 0 : index
        %51 = vector.load %arg7[%c0_17, %c0_18] : memref<8x1xf32, #tpu.memory_space<vmem>>, vector<8x1xf32>
        %cst_19 = arith.constant 0.000000e+00 : f32
        %52 = vector.broadcast %cst_19 : f32 to vector<8x1xf32>
        %53 = arith.maximumf %2, %52 : vector<8x1xf32>
        %cst_20 = arith.constant 4.800000e+01 : f32
        %54 = vector.broadcast %cst_20 : f32 to vector<8x1xf32>
        %55 = arith.mulf %53, %54 : vector<8x1xf32>
        %56 = arith.subf %50, %55 : vector<8x1xf32>
        %57 = arith.mulf %53, %53 : vector<8x1xf32>
        %cst_21 = arith.constant 4.800000e+01 : f32
        %58 = vector.broadcast %cst_21 : f32 to vector<8x1xf32>
        %59 = arith.mulf %57, %58 : vector<8x1xf32>
        %60 = arith.subf %51, %59 : vector<8x1xf32>
        %cst_22 = arith.constant 0.00297619053 : f32
        %61 = vector.broadcast %cst_22 : f32 to vector<8x1xf32>
        %62 = arith.mulf %56, %61 : vector<8x1xf32>
        %cst_23 = arith.constant 0.00297619053 : f32
        %63 = vector.broadcast %cst_23 : f32 to vector<8x1xf32>
        %64 = arith.mulf %60, %63 : vector<8x1xf32>
        %65 = arith.mulf %62, %62 : vector<8x1xf32>
        %66 = arith.subf %64, %65 : vector<8x1xf32>
        %cst_24 = arith.constant 0.000000e+00 : f32
        %67 = vector.broadcast %cst_24 : f32 to vector<8x1xf32>
        %68 = arith.maximumf %66, %67 : vector<8x1xf32>
        %cst_25 = arith.constant 9.99999974E-6 : f32
        %69 = vector.broadcast %cst_25 : f32 to vector<8x1xf32>
        %70 = arith.addf %68, %69 : vector<8x1xf32>
        %71 = math.rsqrt %70 : vector<8x1xf32>
        %72 = vector.extract_strided_slice %0 {offsets = [0, 5], sizes = [8, 4], strides = [1, 1]} : vector<9x23xf32> to vector<8x4xf32>
        %73 = vector.extract_strided_slice %0 {offsets = [8, 5], sizes = [1, 4], strides = [1, 1]} : vector<9x23xf32> to vector<1x4xf32>
        %74 = vector.extract_strided_slice %0 {offsets = [0, 9], sizes = [8, 4], strides = [1, 1]} : vector<9x23xf32> to vector<8x4xf32>
        %75 = vector.extract_strided_slice %0 {offsets = [0, 13], sizes = [8, 1], strides = [1, 1]} : vector<9x23xf32> to vector<8x1xf32>
        %76 = vector.extract_strided_slice %0 {offsets = [0, 14], sizes = [8, 4], strides = [1, 1]} : vector<9x23xf32> to vector<8x4xf32>
        %77 = vector.extract_strided_slice %0 {offsets = [8, 14], sizes = [1, 4], strides = [1, 1]} : vector<9x23xf32> to vector<1x4xf32>
        %78 = vector.extract_strided_slice %0 {offsets = [0, 18], sizes = [8, 4], strides = [1, 1]} : vector<9x23xf32> to vector<8x4xf32>
        %79 = vector.extract_strided_slice %0 {offsets = [0, 22], sizes = [8, 1], strides = [1, 1]} : vector<9x23xf32> to vector<8x1xf32>
        %80 = vector.broadcast %62 : vector<8x1xf32> to vector<8x4xf32>
        %81 = arith.mulf %72, %80 : vector<8x4xf32>
        %cst_26 = arith.constant dense<0.000000e+00> : vector<4xf32>
        %82 = vector.multi_reduction <add>, %81, %cst_26 [0] : vector<8x4xf32> to vector<4xf32>
        %83 = vector.shape_cast %82 : vector<4xf32> to vector<1x4xf32>
        %84 = arith.addf %83, %73 : vector<1x4xf32>
        %cst_27 = arith.constant 0.000000e+00 : f32
        %85 = vector.broadcast %cst_27 : f32 to vector<1x4xf32>
        %86 = arith.maximumf %84, %85 : vector<1x4xf32>
        %87 = vector.broadcast %86 : vector<1x4xf32> to vector<8x4xf32>
        %88 = arith.mulf %74, %87 : vector<8x4xf32>
        %cst_28 = arith.constant dense<0.000000e+00> : vector<8xf32>
        %89 = vector.multi_reduction <add>, %88, %cst_28 [1] : vector<8x4xf32> to vector<8xf32>
        %90 = vector.shape_cast %89 : vector<8xf32> to vector<8x1xf32>
        %91 = arith.addf %90, %75 : vector<8x1xf32>
        %92 = arith.negf %91 : vector<8x1xf32>
        %93 = math.exp %92 : vector<8x1xf32>
        %cst_29 = arith.constant 1.000000e+00 : f32
        %94 = vector.broadcast %cst_29 : f32 to vector<8x1xf32>
        %95 = arith.addf %94, %93 : vector<8x1xf32>
        %96 = arith.divf %94, %95 : vector<8x1xf32>
        %97 = vector.broadcast %62 : vector<8x1xf32> to vector<8x4xf32>
        %98 = arith.mulf %76, %97 : vector<8x4xf32>
        %cst_30 = arith.constant dense<0.000000e+00> : vector<4xf32>
        %99 = vector.multi_reduction <add>, %98, %cst_30 [0] : vector<8x4xf32> to vector<4xf32>
        %100 = vector.shape_cast %99 : vector<4xf32> to vector<1x4xf32>
        %101 = arith.addf %100, %77 : vector<1x4xf32>
        %cst_31 = arith.constant 0.000000e+00 : f32
        %102 = vector.broadcast %cst_31 : f32 to vector<1x4xf32>
        %103 = arith.maximumf %101, %102 : vector<1x4xf32>
        %104 = vector.broadcast %103 : vector<1x4xf32> to vector<8x4xf32>
        %105 = arith.mulf %78, %104 : vector<8x4xf32>
        %cst_32 = arith.constant dense<0.000000e+00> : vector<8xf32>
        %106 = vector.multi_reduction <add>, %105, %cst_32 [1] : vector<8x4xf32> to vector<8xf32>
        %107 = vector.shape_cast %106 : vector<8xf32> to vector<8x1xf32>
        %108 = arith.addf %107, %79 : vector<8x1xf32>
        %109 = math.tanh %108 : vector<8x1xf32>
        %110 = arith.mulf %96, %71 : vector<8x1xf32>
        %c0_33 = arith.constant 0 : index
        %c0_34 = arith.constant 0 : index
        %111 = vector.load %arg8[%c0_33, %c0_34] : memref<8x1xf32, #tpu.memory_space<vmem>>, vector<8x1xf32>
        tpu.vector_store %arg8[%c0_33, %c0_34], %110 {strides = array<i32>} : memref<8x1xf32, #tpu.memory_space<vmem>>, vector<8x1xf32>,
        %112 = arith.mulf %96, %71 : vector<8x1xf32>
        %113 = arith.mulf %112, %62 : vector<8x1xf32>
        %114 = arith.subf %109, %113 : vector<8x1xf32>
        %c0_35 = arith.constant 0 : index
        %c0_36 = arith.constant 0 : index
        %115 = vector.load %arg9[%c0_35, %c0_36] : memref<8x1xf32, #tpu.memory_space<vmem>>, vector<8x1xf32>
        tpu.vector_store %arg9[%c0_35, %c0_36], %114 {strides = array<i32>} : memref<8x1xf32, #tpu.memory_space<vmem>>, vector<8x1xf32>,
      } else {
      }
      %c0_5 = arith.constant 0 : index
      %c0_6 = arith.constant 0 : index
      %c0_7 = arith.constant 0 : index
      %12 = vector.load %arg3[%c0_5, %c0_6, %c0_7] : memref<1x4x128xf32, #tpu.memory_space<vmem>>, vector<1x4x128xf32>
      %13 = vector.shape_cast %12 : vector<1x4x128xf32> to vector<4x128xf32>
      %14 = vector.extract_strided_slice %1 {offsets = [0, 0], sizes = [8, 1], strides = [1, 1]} : vector<8x4xf32> to vector<8x1xf32>
      %15 = vector.extract_strided_slice %13 {offsets = [0, 0], sizes = [1, 128], strides = [1, 1]} : vector<4x128xf32> to vector<1x128xf32>
      %16 = vector.broadcast %14 : vector<8x1xf32> to vector<8x128xf32>
      %17 = vector.broadcast %15 : vector<1x128xf32> to vector<8x128xf32>
      %18 = arith.mulf %16, %17 : vector<8x128xf32>
      %19 = vector.extract_strided_slice %1 {offsets = [0, 1], sizes = [8, 1], strides = [1, 1]} : vector<8x4xf32> to vector<8x1xf32>
      %20 = vector.extract_strided_slice %13 {offsets = [1, 0], sizes = [1, 128], strides = [1, 1]} : vector<4x128xf32> to vector<1x128xf32>
      %21 = vector.broadcast %19 : vector<8x1xf32> to vector<8x128xf32>
      %22 = vector.broadcast %20 : vector<1x128xf32> to vector<8x128xf32>
      %23 = arith.mulf %21, %22 : vector<8x128xf32>
      %24 = arith.addf %18, %23 : vector<8x128xf32>
      %25 = vector.extract_strided_slice %1 {offsets = [0, 2], sizes = [8, 1], strides = [1, 1]} : vector<8x4xf32> to vector<8x1xf32>
      %26 = vector.extract_strided_slice %13 {offsets = [2, 0], sizes = [1, 128], strides = [1, 1]} : vector<4x128xf32> to vector<1x128xf32>
      %27 = vector.broadcast %25 : vector<8x1xf32> to vector<8x128xf32>
      %28 = vector.broadcast %26 : vector<1x128xf32> to vector<8x128xf32>
      %29 = arith.mulf %27, %28 : vector<8x128xf32>
      %30 = arith.addf %24, %29 : vector<8x128xf32>
      %31 = vector.extract_strided_slice %1 {offsets = [0, 3], sizes = [8, 1], strides = [1, 1]} : vector<8x4xf32> to vector<8x1xf32>
      %32 = vector.extract_strided_slice %13 {offsets = [3, 0], sizes = [1, 128], strides = [1, 1]} : vector<4x128xf32> to vector<1x128xf32>
      %33 = vector.broadcast %31 : vector<8x1xf32> to vector<8x128xf32>
      %34 = vector.broadcast %32 : vector<1x128xf32> to vector<8x128xf32>
      %35 = arith.mulf %33, %34 : vector<8x128xf32>
      %36 = arith.addf %30, %35 : vector<8x128xf32>
      %37 = vector.broadcast %2 : vector<8x1xf32> to vector<8x128xf32>
      %38 = arith.addf %36, %37 : vector<8x128xf32>
      %cst = arith.constant 0.000000e+00 : f32
      %39 = vector.broadcast %cst : f32 to vector<8x128xf32>
      %40 = arith.maximumf %38, %39 : vector<8x128xf32>
      %c0_8 = arith.constant 0 : index
      %c0_9 = arith.constant 0 : index
      %41 = vector.load %arg8[%c0_8, %c0_9] : memref<8x1xf32, #tpu.memory_space<vmem>>, vector<8x1xf32>
      %42 = vector.broadcast %41 : vector<8x1xf32> to vector<8x128xf32>
      %43 = arith.mulf %42, %40 : vector<8x128xf32>
      %c0_10 = arith.constant 0 : index
      %c0_11 = arith.constant 0 : index
      %44 = vector.load %arg9[%c0_10, %c0_11] : memref<8x1xf32, #tpu.memory_space<vmem>>, vector<8x1xf32>
      %45 = vector.broadcast %44 : vector<8x1xf32> to vector<8x128xf32>
      %46 = arith.addf %43, %45 : vector<8x128xf32>
      %c0_12 = arith.constant 0 : index
      %c0_13 = arith.constant 0 : index
      %c0_14 = arith.constant 0 : index
      %47 = vector.load %arg5[%c0_12, %c0_13, %c0_14] : memref<1x8x128xf32, #tpu.memory_space<vmem>>, vector<1x8x128xf32>
      %48 = vector.shape_cast %47 : vector<1x8x128xf32> to vector<8x128xf32>
      %49 = vector.shape_cast %46 : vector<8x128xf32> to vector<1x8x128xf32>
      tpu.vector_store %arg5[%c0_12, %c0_13, %c0_14], %49 {strides = array<i32>} : memref<1x8x128xf32, #tpu.memory_space<vmem>>, vector<1x8x128xf32>,
    } else {
    }
    return
  }
  func.func @transform_0(%arg0: i32, %arg1: i32, %arg2: i32) -> (i32, i32, i32) {
    %c0_i32 = arith.constant 0 : i32
    %c0_i32_0 = arith.constant 0 : i32
    return %arg0, %c0_i32, %arg2 : i32, i32, i32
  }
  func.func @transform_1(%arg0: i32, %arg1: i32, %arg2: i32) -> (i32, i32) {
    %c0_i32 = arith.constant 0 : i32
    %c0_i32_0 = arith.constant 0 : i32
    %c0_i32_1 = arith.constant 0 : i32
    return %c0_i32, %c0_i32_0 : i32, i32
  }
  func.func @transform_2(%arg0: i32, %arg1: i32, %arg2: i32) -> (i32, i32, i32) {
    %0 = arith.muli %arg2, %arg1 : i32
    %c0_i32 = arith.constant 0 : i32
    %c0_i32_0 = arith.constant 0 : i32
    return %arg0, %c0_i32, %0 : i32, i32, i32
  }
}

</mosaic_0001>

<bundles_post_ra>
// kernel: tpu_custom_call.1
= control target key start
LH: loop header
LB: loop body
LE: loop exit
PB: predicated region body
PF: predicated region fallthrough
CT: control target
= control target key end

     0   :  { %s1340_s0 = inlined_call_operand.hbm [shape: f32[2,4,384], index: 0, kind: input, shape index: {}]   ;;  %s1341_s1 = inlined_call_operand.hbm [shape: f32[9,23], index: 1, kind: input, shape index: {}]   ;;  %s1342_s2 = inlined_call_operand.hbm [shape: f32[2,8,384], index: 2, kind: output, shape index: {}]  }
   0x1   :  { %1358 = sst [smem:[#allocation25_spill]] %s1341_s1 }
   0x2   :  { %1359 = sst [smem:[#allocation26_spill]] %s1342_s2 }
   0x3   :  { %7 = vsyncpa [#allocation7], 0 }
   0x4   :  { %9 = vsyncpa [#allocation7 + $0x1], 0 }
   0x5   :  { %10 = vsyncpa [#allocation10], 0 }
   0x6   :  { %11 = vsyncpa [#allocation8], 0 }
   0x7   :  { %13 = vsyncpa [#allocation8 + $0x1], 0  ;;  %s1015_s9 = smov 0   ;;  %s1017_s10 = smov 0  }
   0x8   :  { %s1019_s11 = smov 0   ;;  %s1021_s12 = smov 0  }
   0x9   :  { %s1023_s13 = smov 0   ;;  %s1025_s14 = smov 0  }
   0xa   :  { %s1027_s15 = smov 0   ;;  %s1029_s16 = smov 0  }
   0xb   :  { %s1031_s17 = smov 0   ;;  %s1033_s18 = smov 0  }
   0xc   :  { %s1035_s19 = smov 0   ;;  %s1037_s20 = smov 0  }
   0xd   :  { %s1039_s21 = smov 0  }
   0xe LB: > { %1360 = sst [smem:[#allocation15_spill]] %s925_s9  ;;  %s578_s22 = sadd.s32 4294967295, %s973_s21   ;;  %s973_s21 = sphi %s1039_s21, %s19_s21   ;;  %s969_s20 = sphi %s1037_s20, %s1413_s20   ;;  %s965_s19 = sphi %s1035_s19, %s1401_s19   ;;  %s961_s18 = sphi %s1033_s18, %s1412_s18   ;;  %s957_s17 = sphi %s1031_s17, %s1411_s17   ;;  %s953_s16 = sphi %s1029_s16, %s1410_s16   ;;  %s949_s15 = sphi %s1027_s15, %s1409_s15   ;;  %s945_s14 = sphi %s1025_s14, %s1408_s14   ;;  %s941_s13 = sphi %s1023_s13, %s1407_s13   ;;  %s937_s12 = sphi %s1021_s12, %s1406_s12   ;;  %s933_s11 = sphi %s1019_s11, %s1405_s11   ;;  %s929_s10 = sphi %s1017_s10, %s1404_s10   ;;  %s925_s9 = sphi %s1015_s9, %s1398_s9  }
   0xf   : > { %1361 = sst [smem:[#allocation16_spill]] %s929_s10  ;;  %s579_s23 = sadd.s32 4294967294, %s973_s21  }
  0x10   : > { %1362 = sst [smem:[#allocation17_spill]] %s949_s15  ;;  %p60_p0 = scmp.ne.s32.totalorder %s941_s13, %s937_s12 }
  0x11   : > { %1363 = sst [smem:[#allocation18_spill]] %s953_s16  ;;  %p1081_p1 = scmp.eq.s32.totalorder %s578_s22, 0 }
  0x12   : > { %1364 = sst [smem:[#allocation19_spill]] %s957_s17  ;;  %p108_p2 = scmp.ne.s32.totalorder %s933_s11, %s929_s10 }
  0x13   : > { %1365 = sst [smem:[#allocation20_spill]] %s965_s19  ;;  %p109_p3 = scmp.eq.s32.totalorder %s578_s22, 11 }
  0x14   : > { %s1366_s24 = scalar_select %p1081_p1, 1, 0 }
  0x15   : > { %p1089_p4 = por %p1081_p1, %p60_p0  ;;  %p114_p5 = scmp.ne.s32.totalorder %s929_s10, %s925_s9 }
  0x16   : > { %p1095_p6 = por %p109_p3, %p108_p2  ;;  %p115_p7 = scmp.eq.s32.totalorder %s579_s23, 11 }
  0x17   : > { %s1367_s25 = scalar_select %p1089_p4, 1, 0 }
  0x18   : > { %s1368_s26 = scalar_select %p1095_p6, 1, 0 }
  0x19   : > { %p580_p8 = scmp.ge.s32.totalorder %s973_s21, 1  ;;  %p122_p9 = scmp.lt.s32.totalorder %s973_s21, 13 }
  0x1a   : > { %1369 = sst [smem:[#allocation21_spill]] %s1368_s26  ;;  %p1101_p10 = por %p115_p7, %p114_p5 }
  0x1b   : > { %p1105_p11 = pnand %p580_p8, %p122_p9  ;;  %s975_s29 = smov [#allocation9]  }
  0x1c   : > { %s1370_s27 = scalar_select %p1101_p10, 1, 0 }
  0x1d   : > { %s1372_s28 = scalar_select %p1105_p11, 1, 0 }
  0x1e   : > { %1371 = sst [smem:[#allocation22_spill]] %s1370_s27  ;;  %s134_s30 = sshll.u32 %s975_s29, 4  ;;  %s135_s30 = int_to_ptr.vmem [resolvable:$true] %s134_s30 }
  0x1f   : > { %p608_p12 = pneg %p1105_p11  ;;  %s1374_s1 = sld [smem:[#allocation25_spill]] }
  0x21   : > { %p1113_p13 = pnand %p608_p12, %p1081_p1 }
  0x23   : > { %p775_p2 = pneg %p1113_p13 }
  0x25   : > { %s773_s6 = scalar_lea.hbm %s1374_s1, 256 }
  0x26   : > { %p774_p0 = scmp.ne.s32.totalorder %s1374_s1, %s773_s6  ;;  %p780_p7 = scmp.lt.u32.totalorder %s773_s6, %s1374_s1 }
  0x28   : > { %p776_p3 = pnand %p775_p2, %p774_p0 }
  0x2a   : > { %p777_p5 = pneg %p776_p3 }
  0x2c   : > { %p782_p8 = pnand %p780_p7, %p777_p5 }
  0x2e   : > { %785 = shalt.err (!%p782_p8)
}
  0x2f   : > { %s786_s23 = scalar_lea.vmem %s135_s30, 256  ;;  %p794_p6 = scmp.lt.s32.totalorder %s135_s30, %s135_s30 }
  0x30   : > { %p787_p9 = scmp.ne.s32.totalorder %s135_s30, %s786_s23  ;;  %p795_p1 = scmp.lt.s32.totalorder %s786_s23, %s786_s23 }
  0x32   : > { %p789_p12 = pnand %p787_p9, %p775_p2  ;;  %p796_p4 = por %p795_p1, %p794_p6 }
  0x34   : > { %p790_p10 = pneg %p789_p12 }
  0x36   : > { %p797_p11 = pnand %p796_p4, %p790_p10 }
  0x38   : > { %800 = shalt.err (!%p797_p11)
}
  0x39   : > { %s976_s29 = smov 128   ;;  %s977_s4 = smov 8  }
  0x3a   : > { %611 = dma.hbm_to_vmem [thread:$0]  (!%p1113_p13), %s1374_s1, 256, %s135_s30, [#allocation10], %s976_s29, %s976_s29, %s977_s4  }
  0x3b   : > { %s31_s7 = sadd.s32 1, %s961_s18  ;;  %s34_s8 = sadd.s32 1, %s965_s19 }
  0x3c   : > { %p32_p1 = scmp.ge.s32.totalorder %s31_s7, 3  ;;  %s38_s12 = sadd.s32 1, %s969_s20 }
  0x3d   : > { %s47_s22 = sadd.s32 1, %s945_s14  ;;  %p54_p4 = scmp.ne.s32.totalorder %s945_s14, %s941_s13 }
  0x3e   : > { %s1415_s7 = smov (%p32_p1, %s31_s7), 0  ;;  %s1417_s8 = smov (!%p32_p1, %s34_s8), %s965_s19 }
  0x3f   : > { %1375 = sst [smem:[#allocation23_spill]] %s1415_s7  ;;  %s43_s3 = ssub.s32 %s961_s18, %s1415_s7 }
  0x40   : > { %p55_p6 = scmp.eq.s32.totalorder %s973_s21, 0  ;;  %p36_p10 = scmp.ge.s32.totalorder %s1417_s8, 2 }
  0x41   : > { %s91_s30 = smul.u32 %s961_s18, %s965_s19  ;;  %s98_s29 = sadd.s32 1, %s933_s11 }
  0x42   : > { %p1147_p11 = por %p55_p6, %p54_p4  ;;  %s1419_s8 = smov (%p36_p10, %s1417_s8), 0 }
  0x43   : > { %1377 = sst [smem:[#allocation24_spill]] %s1419_s8  ;;  %s1421_s12 = smov (!%p36_p10, %s38_s12), %s969_s20 }
  0x44   : > { %s92_s4 = smul.u32 %s1419_s8, %s1415_s7  ;;  %p621_p13 = scmp.lt.s32.totalorder %s973_s21, 12 }
  0x45   : > { %p40_p0 = scmp.ge.s32.totalorder %s1421_s12, 2  ;;  %s148_s5 = sand.u32 1, %s945_s14  }
  0x46   : > { %s94_s6 = ssub.s32 %s91_s30, %s92_s4  ;;  %s583_s1 = sshll.u32 %s148_s5, 2 }
  0x47   : > { %s1423_s12 = smov (%p40_p0, %s1421_s12), 0  ;;  %s598_s19 = smul.u32 3, %s969_s20 }
  0x48   : > { %s42_s27 = ssub.s32 %s969_s20, %s1423_s12  ;;  %s152_s8 = scalar_lea.vmem [#allocation6], %s583_s1 }
  0x49   : > { %s44_s9 = sor.u32 %s43_s3, %s42_s27  ;;  %s95_s2 = sor.u32 %s94_s6, %s42_s27 }
  0x4a   : > { %p45_p2 = scmp.eq.s32.totalorder %s44_s9, 0  ;;  %p96_p3 = scmp.eq.s32.totalorder %s95_s2, 0 }
  0x4b   : > { %s157_s26 = sadd.s32 %s961_s18, %s598_s19  ;;  %s161_s7 = sshll.u32 %s152_s8, 4  ;;  %s1171_s7 = int_to_ptr.vmem [resolvable:$true] %s161_s7 }
  0x4c   : > { %s1166_s17 = scalar_select %p45_p2, %s945_s14, %s47_s22  }
  0x4d   : > { %s1169_s15 = scalar_select %p96_p3, %s933_s11, %s98_s29  }
  0x4e   : > { %s584_s30 = sshll.u32 %s157_s26, 6  ;;  %p1182_p5 = pnand %p621_p13, %p1147_p11 }
  0x4f   : > { %s1176_s10 = scalar_lea.hbm %s1340_s0, %s584_s30  ;;  %s149_s2 = scalar_lea.sflag [#allocation7], %s148_s5 }
  0x50   : > { %s801_s9 = scalar_lea.hbm %s1176_s10, 64  ;;  %p803_p8 = pneg %p1182_p5 }
  0x51   : > { %p802_p7 = scmp.ne.s32.totalorder %s1176_s10, %s801_s9  ;;  %s806_s26 = scalar_lea.hbm %s1340_s0, 384 }
  0x52   : > { %p807_p1 = scmp.lt.u32.totalorder %s1176_s10, %s1340_s0  ;;  %p808_p4 = scmp.lt.u32.totalorder %s806_s26, %s801_s9 }
  0x53   : > { %p804_p9 = pnand %p803_p8, %p802_p7  ;;  %p810_p10 = scmp.lt.u32.totalorder %s801_s9, %s1176_s10 }
  0x54   : > { %p809_p6 = por %p808_p4, %p807_p1 }
  0x55   : > { %p805_p12 = pneg %p804_p9 }
  0x56   : > { %p811_p11 = por %p810_p10, %p809_p6 }
  0x58   : > { %p812_p13 = pnand %p811_p11, %p805_p12 }
  0x5a   : > { %815 = shalt.err (!%p812_p13)
}
  0x5b   : > { %s816_s22 = scalar_lea.vmem %s1171_s7, 64  ;;  %s978_s3 = smov [#allocation6]  }
  0x5c   : > { %p817_p0 = scmp.ne.s32.totalorder %s1171_s7, %s816_s22  ;;  %s821_s23 = sshll.u32 %s978_s3, 4  ;;  %s822_s23 = int_to_ptr.vmem [resolvable:$false] %s821_s23 }
  0x5d   : > { %s823_s29 = scalar_lea.vmem %s822_s23, 128  ;;  %p824_p7 = scmp.lt.s32.totalorder %s1171_s7, %s822_s23 }
  0x5e   : > { %p819_p2 = pnand %p817_p0, %p803_p8  ;;  %p825_p9 = scmp.lt.s32.totalorder %s823_s29, %s816_s22 }
  0x60   : > { %p820_p3 = pneg %p819_p2  ;;  %p826_p1 = por %p825_p9, %p824_p7 }
  0x62   : > { %p827_p4 = pnand %p826_p1, %p820_p3 }
  0x64   : > { %830 = shalt.err (!%p827_p4)
}
  0x65   : > { %615 = dma.hbm_to_vmem [thread:$0]  (!%p1182_p5), %s1176_s10, 64, %s1171_s7, %s149_s2  }
  0x66   : > { %p1379_p12 = scmp.ne.s32.totalorder %s1372_s28, 0 }
  0x67   : > { %s172_s5 = sand.u32 (!%p1379_p12), 1, %s941_s13   ;;  %p1380_p8 = scmp.ne.s32.totalorder (!%p1379_p12), %s1367_s25, 0 }
  0x68   : > { %170 = sbr.rel (%p1379_p12) target bundleno = 1539 (0x603), region = 28  ;;  %s1214_s6 = sshll.u32 (!%p1379_p12), %s172_s5, 2 }
  0x69   : > { %s173_s30 = scalar_lea.sflag (!%p1379_p12), [#allocation7], %s172_s5  ;;  %s176_s4 = scalar_lea.vmem (!%p1379_p12), [#allocation6], %s1214_s6 }
  0x6f   : > { %912 = dma.done.wait (%p1380_p8), %s173_s30, 64  }
  0x70   : > { %914 = vsyncadd (%p1380_p8), %s173_s30, 4294967232  ;;  %p1381_p6 = scmp.ne.s32.totalorder %s1366_s24, 0 }
  0x72   : > { %916 = dma.done.wait (%p1381_p6), [#allocation10], 256  }
  0x73   : > { %918 = vsyncadd (%p1381_p6), [#allocation10], 4294967040  ;;  %s1382_s10 = sld [smem:[#allocation16_spill]]  ;;  %v1230_v0 = vld [vmem:[#allocation9] sm:$0xff]  ;;  %v1232_v1 = vld [vmem:[#allocation9 + $0x8] sm:$0x1] }
  0x74   : > { %s1383_s25 = sld [smem:[#allocation18_spill]] }
  0x79   : > { %s198_s28 = sand.u32 1, %s1382_s10  }
  0x7a   : > { %s1228_s7 = sshll.u32 %s198_s28, 3  ;;  %p589_p5 = scmp.ne.s32.totalorder %s1383_s25, 0 }
  0x7b   : > { %s200_s1 = scalar_lea.vmem [#allocation11], %s1228_s7  ;;  %s1384_s2 = sld [smem:[#allocation17_spill]] (!%p589_p5) }
  0x7c   : > { %207 = sbr.rel (%p589_p5) target bundleno = 432 (0x1b0), region = 40 }
  0x81   : > { %p590_p10 = scmp.ne.s32.totalorder (!%p589_p5), %s1384_s2, 0 }
  0x83   : > { %211 = sbr.rel (%p590_p10) target bundleno = 138 (0x8a), region = 44  ;;  %vm212_vm0 = vcmask (!%p590_p10), 7168   ;;  %v979_v2 = vmov (!%p590_p10), 0.0  }
  0x84   : > { %213 = vst.msk [vmem:[#allocation2] sm:$0xff] (!%p590_p10), %vm212_vm0, %v979_v2  ;;  %214 = vst.msk [vmem:[#allocation3] sm:$0xff] (!%p590_p10), %vm212_vm0, %v979_v2 }
  0x8a PF: > { %v980_v3 = vmov 0   ;;  %v981_v4 = vmov 2   ;;  %v982_v5 = vmov 1   ;;  %v983_v6 = vmov 3   ;;  %v215_v12 = vld [vmem:[%s176_s4] sm:$0xf] }
  0x8b   : > { %751 = vset.pattern.permute.xlu0 %v980_v3  ;;  %753 = vset.pattern.permute.xlu1 %v981_v4  ;;  %v984_v7 = vmov 4   ;;  %v221_v8 = vlaneseq  ;;  %v262_v34 = vld [vmem:[#allocation2] sm:$0xff]  ;;  %vm266_vm1 = vcmask 7168   ;;  %v268_v36 = vld [vmem:[#allocation3] sm:$0xff] }
  0x8c   : > { %218 = vperm.xlu0 %751, %v1230_v0   ;;  %237 = vperm.xlu1 %753, %v1230_v0  }
  0x8d   : > { %v222_v9 = vshrl.u32 %v221_v8, 7 }
  0x8f   : > { %v223_v10 = vsub.s32 0, %v222_v9  ;;  %v232_v11 = vsub.s32 1, %v222_v9  ;;  %v242_v15 = vsub.s32 2, %v222_v9  ;;  %v252_v16 = vsub.s32 3, %v222_v9 }
  0x90   : > { %752 = vset.pattern.permute.xlu0 %v982_v5  ;;  %754 = vset.pattern.permute.xlu1 %v983_v6 }
  0x91   : > { %227 = vperm.xlu0 %752, %v1230_v0   ;;  %247 = vperm.xlu1 %754, %v1230_v0   ;;  %v224_v17 = vrot.slane %v215_v12, %v223_v10  ;;  %v233_v18 = vrot.slane %v215_v12, %v232_v11  ;;  %v243_v19 = vrot.slane %v215_v12, %v242_v15 }
  0x92   : > { %v253_v20 = vrot.slane %v215_v12, %v252_v16 }
  0x95   : > { %755 = vset.pattern.permute.xlu1 %v984_v7  ;;  %756 = vset.pattern.permute.xlu0 %v984_v7 }
  0x96   : > { %257 = vperm.xlu1 %755, %v1230_v0  }
 0x10b   : > { %v219_v13 = vpop.permute.xlu0 %218  ;;  %v238_v14 = vpop.permute.xlu1 %237 }
 0x10c   : > { %v225_v23 = vmul.f32 %v224_v17, %v219_v13  ;;  %v244_v25 = vmul.f32 %v243_v19, %v238_v14 }
 0x110   : > { %v228_v21 = vpop.permute.xlu0 %227  ;;  %v248_v22 = vpop.permute.xlu1 %247 }
 0x111   : > { %v234_v24 = vmul.f32 %v233_v18, %v228_v21  ;;  %v254_v27 = vmul.f32 %v253_v20, %v248_v22 }
 0x113   : > { %v235_v26 = vadd.f32 %v234_v24, %v225_v23 }
 0x115   : > { %v245_v28 = vadd.f32 %v244_v25, %v235_v26  ;;  %v258_v29 = vpop.permute.xlu1 %257 }
 0x117   : > { %v255_v30 = vadd.f32 %v254_v27, %v245_v28 }
 0x119   : > { %v260_v31 = vadd.f32 %v258_v29, %v255_v30 }
 0x11b   : > { %v261_v32 = vmax.f32 %v260_v31, 0.0 }
 0x11d   : > { %263 = vadd.xlane.f32.xlu0 %v261_v32  ;;  %v269_v33 = vmul.f32 %v261_v32, %v261_v32 }
 0x11f   : > { %270 = vadd.xlane.f32.xlu1 %v269_v33 }
 0x1aa   : > { %v264_v35 = vpop.xlane.xlu0 %263 }
 0x1ab   : > { %v265_v37 = vadd.f32 %v264_v35, %v262_v34 }
 0x1ac   : > { %v271_v38 = vpop.xlane.xlu1 %270 }
 0x1ad   : > { %267 = vst.msk [vmem:[#allocation2] sm:$0xff] %vm266_vm1, %v265_v37  ;;  %v272_v39 = vadd.f32 %v271_v38, %v268_v36 }
 0x1af   : > { %273 = vst.msk [vmem:[#allocation3] sm:$0xff] %vm266_vm1, %v272_v39 }
 0x1b0 PF: > { %s1385_s24 = sld [smem:[#allocation18_spill]] }
 0x1b6   : > { %p591_p11 = scmp.ne.s32.totalorder %s1385_s24, 1 }
 0x1b7   : > { %s1386_s9 = sld [smem:[#allocation17_spill]] (!%p591_p11) }
 0x1b8   : > { %277 = sbr.rel (%p591_p11) target bundleno = 1511 (0x5e7), region = 48 }
 0x1bd   : > { %p592_p13 = scmp.ne.s32.totalorder (!%p591_p11), %s1386_s9, 0 }
 0x1bf   : > { %281 = sbr.rel (%p592_p13) target bundleno = 1359 (0x54f), region = 52  ;;  %v284_v40 = vmax.f32 (!%p592_p13), %v1230_v0, 0.0  ;;  %v985_v41 = vmov (!%p592_p13), 0   ;;  %s986_s16 = smov (!%p592_p13), 124   ;;  %v282_v43 = vld [vmem:[#allocation2] sm:$0xff] (!%p592_p13)  ;;  %vm311_vm2 = vcmask (!%p592_p13), 72744   ;;  %v321_v59 = vlaneseq (!%p592_p13) }
 0x1c0   : > { %757 = vset.pattern.permute.xlu0 (!%p592_p13), %v985_v41  ;;  %vm345_vm3 = vcmask (!%p592_p13), 146544   ;;  %s987_s19 = smov (!%p592_p13), 4   ;;  %s988_s26 = smov (!%p592_p13), 119   ;;  %v283_v14 = vld [vmem:[#allocation3] sm:$0xff] (!%p592_p13)  ;;  %vm334_vm4 = vcmask (!%p592_p13), 31744   ;;  %vm382_vm5 = vcmask (!%p592_p13), 7168  }
 0x1c1   : > { %v285_v42 = vmul.f32 (!%p592_p13), 48.0, %v284_v40  ;;  %v291_v46 = vmul.f32 (!%p592_p13), %v284_v40, %v284_v40  ;;  %v322_v2 = vshrl.u32 (!%p592_p13), %v321_v59, 7  ;;  %s989_s27 = smov (!%p592_p13), 110   ;;  %s990_s8 = smov (!%p592_p13), 13  }
 0x1c2   : > { %s991_s22 = smov (!%p592_p13), 115   ;;  %s992_s3 = smov (!%p592_p13), 9  }
 0x1c3   : > { %287 = vrot.lane.b32.xlu0 (!%p592_p13), %v285_v42, %s986_s16  ;;  %v292_v48 = vmul.f32 (!%p592_p13), 48.0, %v291_v46  ;;  %v323_v6 = vsub.s32 (!%p592_p13), 0, %v322_v2  ;;  %s993_s23 = smov (!%p592_p13), 106  }
 0x235   : > { %v288_v44 = vpop.permute.xlu0 %287 }
 0x236   : > { %v290_v45 = vsub.f32 %v282_v43, %v288_v44 }
 0x238   : > { %v298_v47 = vmul.f32 0.0029761905, %v290_v45 }
 0x23a   : > { %307 = vperm.xlu0 %757, %v298_v47   ;;  %v300_v18 = vmul.f32 %v298_v47, %v298_v47 }
 0x23e   : > { %294 = vrot.lane.b32.xlu0 %v292_v48, %s986_s16 }
 0x2b9   : > { %v308_v49 = vpop.permute.xlu0 %307 }
 0x2ba   : > { %v310_v50 = vmul.f32 %v308_v49, %v1230_v0 }
 0x2bc   : > { %v312_v51 = vsel %vm311_vm2, %v310_v50, 0.0  ;;  %v346_v52 = vsel %vm345_vm3, %v310_v50, 0.0 }
 0x2bd   : > { %v313_v53 = vrot.slane %v312_v51, 4  ;;  %v347_v54 = vrot.slane %v346_v52, 4  ;;  %v295_v15 = vpop.permute.xlu0 %294 }
 0x2be   : > { %v297_v16 = vsub.f32 %v283_v14, %v295_v15 }
 0x2bf   : > { %v314_v55 = vadd.f32 %v313_v53, %v312_v51  ;;  %v348_v56 = vadd.f32 %v347_v54, %v346_v52 }
 0x2c0   : > { %v299_v17 = vmul.f32 0.0029761905, %v297_v16 }
 0x2c1   : > { %v315_v57 = vrot.slane %v314_v55, 2  ;;  %v349_v58 = vrot.slane %v348_v56, 2 }
 0x2c2   : > { %v301_v19 = vsub.f32 %v299_v17, %v300_v18 }
 0x2c3   : > { %v316_v60 = vadd.f32 %v315_v57, %v314_v55  ;;  %v350_v61 = vadd.f32 %v349_v58, %v348_v56 }
 0x2c4   : > { %v302_v20 = vmax.f32 %v301_v19, 0.0 }
 0x2c5   : > { %v351_v62 = vrot.slane %v350_v61, 1  ;;  %v317_v63 = vrot.slane %v316_v60, 1 }
 0x2c7   : > { %v318_v3 = vadd.f32 %v317_v63, %v316_v60  ;;  %v352_v4 = vadd.f32 %v351_v62, %v350_v61 }
 0x2c9   : > { %v319_v5 = vadd.f32 %v318_v3, %v1232_v1  ;;  %v353_v7 = vadd.f32 %v352_v4, %v1232_v1  ;;  %v303_v1 = vadd.f32 1e-05, %v302_v20 }
 0x2cb   : > { %v320_v8 = vmax.f32 %v319_v5, 0.0  ;;  %v354_v9 = vmax.f32 %v353_v7, 0.0  ;;  %758 = vrsqrt.f32 %v303_v1 }
 0x2cd   : > { %v324_v10 = vrot.slane %v320_v8, %v323_v6  ;;  %v358_v11 = vrot.slane %v354_v9, %v323_v6 }
 0x2cf   : > { %326 = vrot.lane.b32.xlu1 %v324_v10, %s987_s19 }
 0x2d5   : > { %v759_v25 = vpop.eup %758 }
 0x341   : > { %v327_v12 = vpop.permute.xlu1 %326 }
 0x342   : > { %v329_v13 = vmul.f32 %v327_v12, %v1230_v0 }
 0x344   : > { %331 = vrot.lane.b32.xlu1 %v329_v13, %s988_s26 }
 0x348   : > { %360 = vrot.lane.b32.xlu1 %v358_v11, %s987_s19 }
 0x3b6   : > { %v332_v21 = vpop.permute.xlu1 %331 }
 0x3b7   : > { %v335_v22 = vsel %vm334_vm4, %v332_v21, 0.0 }
 0x3b8   : > { %336 = vadd.xlane.f32.xlu1 %v335_v22 }
 0x3ba   : > { %v361_v23 = vpop.permute.xlu1 %360 }
 0x3bb   : > { %v363_v24 = vmul.f32 %v361_v23, %v1230_v0 }
 0x3bd   : > { %365 = vrot.lane.b32.xlu0 %v363_v24, %s989_s27 }
 0x3c1   : > { %374 = vrot.lane.b32.xlu0 %v759_v25, %s990_s8 }
 0x3c5   : > { %384 = vrot.lane.b32.xlu0 %v298_v47, %s990_s8 }
 0x42f   : > { %v366_v26 = vpop.permute.xlu0 %365 }
 0x430   : > { %v368_v27 = vsel %vm334_vm4, %v366_v26, 0.0 }
 0x431   : > { %369 = vadd.xlane.f32.xlu0 %v368_v27 }
 0x433   : > { %v375_v33 = vpop.permute.xlu0 %374 }
 0x437   : > { %v385_v36 = vpop.permute.xlu0 %384 }
 0x445   : > { %v337_v28 = vpop.xlane.xlu1 %336 }
 0x446   : > { %v338_v29 = vadd.f32 %v337_v28, %v1230_v0 }
 0x448   : > { %v593_v30 = vmul.f32 -1.442695, %v338_v29 }
 0x44a   : > { %760 = vpow2.f32 %v593_v30 }
 0x454   : > { %v761_v31 = vpop.eup %760 }
 0x455   : > { %v342_v32 = vadd.f32 1.0, %v761_v31 }
 0x457   : > { %762 = vrcp.f32 %v342_v32 }
 0x461   : > { %v763_v34 = vpop.eup %762 }
 0x462   : > { %v377_v35 = vmul.f32 %v763_v34, %v375_v33 }
 0x464   : > { %379 = vrot.lane.b32.xlu0 %v377_v35, %s991_s22  ;;  %v387_v37 = vmul.f32 %v385_v36, %v377_v35 }
 0x466   : > { %389 = vrot.lane.b32.xlu1 %v387_v37, %s992_s3 }
 0x4be   : > { %v370_v38 = vpop.xlane.xlu0 %369 }
 0x4bf   : > { %v371_v39 = vadd.f32 %v370_v38, %v1230_v0 }
 0x4c1   : > { %764 = vtanh.f32 %v371_v39 }
 0x4cb   : > { %v765_v41 = vpop.eup %764 }
 0x4d6   : > { %v380_v40 = vpop.permute.xlu0 %379 }
 0x4d7   : > { %383 = vst.msk [vmem:[#allocation4] sm:$0xff] %vm382_vm5, %v380_v40 }
 0x4d8   : > { %v390_v42 = vpop.permute.xlu1 %389 }
 0x4d9   : > { %v392_v43 = vsub.f32 %v765_v41, %v390_v42 }
 0x4db   : > { %394 = vrot.lane.b32.xlu1 %v392_v43, %s993_s23 }
 0x54d   : > { %v395_v44 = vpop.permute.xlu1 %394 }
 0x54e   : > { %397 = vst.msk [vmem:[#allocation5] sm:$0xff] %vm382_vm5, %v395_v44 }
 0x54f PF: > { %v994_v45 = vmov 0   ;;  %v995_v46 = vmov 2   ;;  %v996_v47 = vmov 1   ;;  %v997_v48 = vmov 3   ;;  %v445_v49 = vld [vmem:[#allocation4] sm:$0xff] }
 0x550   : > { %766 = vset.pattern.permute.xlu0 %v994_v45  ;;  %768 = vset.pattern.permute.xlu1 %v995_v46  ;;  %v998_v50 = vmov 4   ;;  %v404_v52 = vlaneseq  ;;  %v398_v56 = vld [vmem:[%s176_s4] sm:$0xf] }
 0x551   : > { %401 = vperm.xlu0 %766, %v1230_v0   ;;  %420 = vperm.xlu1 %768, %v1230_v0  }
 0x552   : > { %v405_v53 = vshrl.u32 %v404_v52, 7 }
 0x554   : > { %v406_v54 = vsub.s32 0, %v405_v53  ;;  %v415_v55 = vsub.s32 1, %v405_v53  ;;  %v425_v59 = vsub.s32 2, %v405_v53  ;;  %v435_v60 = vsub.s32 3, %v405_v53 }
 0x555   : > { %767 = vset.pattern.permute.xlu0 %v996_v47  ;;  %769 = vset.pattern.permute.xlu1 %v997_v48  ;;  %v452_v51 = vld [vmem:[#allocation5] sm:$0xff] }
 0x556   : > { %410 = vperm.xlu0 %767, %v1230_v0   ;;  %430 = vperm.xlu1 %769, %v1230_v0   ;;  %v407_v61 = vrot.slane %v398_v56, %v406_v54  ;;  %v416_v62 = vrot.slane %v398_v56, %v415_v55  ;;  %v426_v63 = vrot.slane %v398_v56, %v425_v59 }
 0x557   : > { %v436_v2 = vrot.slane %v398_v56, %v435_v60 }
 0x55a   : > { %770 = vset.pattern.permute.xlu1 %v998_v50  ;;  %771 = vset.pattern.permute.xlu0 %v994_v45 }
 0x55b   : > { %440 = vperm.xlu1 %770, %v1230_v0   ;;  %448 = vperm.xlu0 %771, %v445_v49  }
 0x55f   : > { %772 = vset.pattern.permute.xlu1 %v994_v45 }
 0x560   : > { %455 = vperm.xlu1 %772, %v452_v51  }
 0x5d0   : > { %v402_v57 = vpop.permute.xlu0 %401  ;;  %v421_v58 = vpop.permute.xlu1 %420 }
 0x5d1   : > { %v408_v4 = vmul.f32 %v407_v61, %v402_v57  ;;  %v427_v6 = vmul.f32 %v426_v63, %v421_v58 }
 0x5d5   : > { %v411_v3 = vpop.permute.xlu0 %410  ;;  %v431_v0 = vpop.permute.xlu1 %430 }
 0x5d6   : > { %v417_v5 = vmul.f32 %v416_v62, %v411_v3  ;;  %v437_v8 = vmul.f32 %v436_v2, %v431_v0 }
 0x5d8   : > { %v418_v7 = vadd.f32 %v417_v5, %v408_v4 }
 0x5da   : > { %v428_v9 = vadd.f32 %v427_v6, %v418_v7  ;;  %v441_v10 = vpop.permute.xlu1 %440  ;;  %v449_v13 = vpop.permute.xlu0 %448 }
 0x5dc   : > { %v438_v11 = vadd.f32 %v437_v8, %v428_v9 }
 0x5de   : > { %v443_v12 = vadd.f32 %v441_v10, %v438_v11 }
 0x5df   : > { %v456_v15 = vpop.permute.xlu1 %455 }
 0x5e0   : > { %v444_v14 = vmax.f32 %v443_v12, 0.0 }
 0x5e2   : > { %v451_v16 = vmul.f32 %v449_v13, %v444_v14 }
 0x5e4   : > { %v458_v17 = vadd.f32 %v456_v15, %v451_v16 }
 0x5e6   : > { %459 = vst [vmem:[%s200_s1] sm:$0xff] %v458_v17 }
 0x5e7 PF: > { %s1387_s29 = sld [smem:[#allocation18_spill]]  ;;  %s1388_s5 = sld [smem:[#allocation17_spill]] }
 0x5e8   : > { %s1389_s6 = sld [smem:[#allocation19_spill]]  ;;  %s1391_s4 = sld [smem:[#allocation21_spill]] }
 0x5e9   : > { %s477_s2 = sshll.u32 %s200_s1, 4  ;;  %s1392_s26 = sld [smem:[#allocation26_spill]]  ;;  %s1268_s2 = int_to_ptr.vmem [resolvable:$true] %s477_s2 }
 0x5ea   : > { %s461_s8 = scalar_lea.sflag [#allocation8], %s198_s28  ;;  %s831_s22 = scalar_lea.vmem %s1268_s2, 128 }
 0x5eb   : > { %p832_p0 = scmp.ne.s32.totalorder %s1268_s2, %s831_s22  ;;  %s999_s7 = smov [#allocation11]  }
 0x5ec   : > { %s835_s1 = sshll.u32 %s999_s7, 4  ;;  %s836_s1 = int_to_ptr.vmem [resolvable:$false] %s835_s1 }
 0x5ed   : > { %s468_s10 = smul.u32 %s1388_s5, %s1387_s29  ;;  %s837_s3 = scalar_lea.vmem %s836_s1, 256 }
 0x5ee   : > { %s599_s25 = smul.u32 3, %s1389_s6  ;;  %p1393_p2 = scmp.ne.s32.totalorder %s1391_s4, 0 }
 0x5ef   : > { %p838_p9 = scmp.lt.s32.totalorder %s1268_s2, %s836_s1  ;;  %p839_p1 = scmp.lt.s32.totalorder %s837_s3, %s831_s22 }
 0x5f0   : > { %s473_s24 = sadd.s32 %s599_s25, %s468_s10  ;;  %p833_p3 = pnand %p832_p0, %p1393_p2 }
 0x5f1   : > { %s595_s9 = sshll.u32 %s473_s24, 7  ;;  %p840_p4 = por %p839_p1, %p838_p9 }
 0x5f2   : > { %s475_s27 = scalar_lea.hbm %s1392_s26, %s595_s9  ;;  %p834_p7 = pneg %p833_p3 }
 0x5f4   : > { %p841_p12 = pnand %p840_p4, %p834_p7 }
 0x5f6   : > { %844 = shalt.err (!%p841_p12)
}
 0x5f7   : > { %s845_s23 = scalar_lea.hbm %s475_s27, 128  ;;  %s849_s5 = scalar_lea.hbm %s1392_s26, 768 }
 0x5f8   : > { %p846_p8 = scmp.ne.s32.totalorder %s475_s27, %s845_s23  ;;  %p850_p10 = scmp.lt.u32.totalorder %s475_s27, %s1392_s26 }
 0x5f9   : > { %p851_p11 = scmp.lt.u32.totalorder %s849_s5, %s845_s23  ;;  %p853_p0 = scmp.lt.u32.totalorder %s845_s23, %s475_s27 }
 0x5fa   : > { %p847_p6 = pnand %p846_p8, %p1393_p2 }
 0x5fb   : > { %p852_p13 = por %p851_p11, %p850_p10 }
 0x5fc   : > { %p848_p5 = pneg %p847_p6 }
 0x5fd   : > { %p854_p3 = por %p853_p0, %p852_p13 }
 0x5ff   : > { %p855_p7 = pnand %p854_p3, %p848_p5 }
 0x601   : > { %858 = shalt.err (!%p855_p7)
}
 0x602   : > { %606 = dma.vmem_to_hbm [thread:$0]  (%p1393_p2), %s1268_s2, 128, %s475_s27, %s461_s8  }
 0x603 PF: > { %s1394_s10 = sld [smem:[#allocation15_spill]]  ;;  %s1395_s25 = sld [smem:[#allocation22_spill]] }
 0x604   : > { %p623_p9 = scmp.ge.s32.totalorder %s973_s21, 2 }
 0x609   : > { %s489_s24 = sand.u32 1, %s1394_s10   ;;  %p1396_p1 = scmp.ne.s32.totalorder %s1395_s25, 0 }
 0x60a   : > { %s490_s9 = scalar_lea.sflag [#allocation8], %s489_s24 }
 0x60b   : > { %p617_p4 = pnand %p623_p9, %p1396_p1 }
 0x60d   : > { %920 = dma.done.wait (!%p617_p4), %s490_s9, 128  }
 0x60e   : > { %922 = vsyncadd (!%p617_p4), %s490_s9, 4294967168  ;;  %s19_s21 = sadd.s32 1, %s973_s21   ;;  %s1398_s9 = sld [smem:[#allocation16_spill]] }
 0x60f   : > { %p1296_p12 = scmp.ge.s32.totalorder %s19_s21, 14   ;;  %s1399_s4 = sld [smem:[#allocation20_spill]] }
 0x610   : > { %s1400_s2 = sld [smem:[#allocation23_spill]]  ;;  %s1401_s19 = sld [smem:[#allocation24_spill]] }
 0x611   : > { %s1402_s27 = smov %s1423_s12  ;;  %s1404_s10 = smov %s933_s11 }
 0x612   : > { %s1405_s11 = smov %s1169_s15  ;;  %s1406_s12 = smov %s941_s13 }
 0x613   : > { %s1407_s13 = smov %s945_s14  ;;  %s1408_s14 = smov %s1166_s17 }
 0x614   : > { %s1409_s15 = smov %s961_s18  ;;  %s1411_s17 = smov %s969_s20 }
 0x615   : > { %s1410_s16 = smov %s1399_s4  ;;  %s1413_s20 = smov %s1402_s27 }
 0x616   : > { %s1412_s18 = smov %s1400_s2  ;;  %18 = sbr.rel (!%p1296_p12) target bundleno = 14 (0xe), region = 93 }
 0x61d   :  { %495 = vsyncpa [#allocation7], 1 }
 0x61e   :  { %497 = vsyncpa [#allocation7 + $0x1], 1 }
 0x61f   :  { %498 = vsyncpa [#allocation10], 1 }
 0x620   :  { %499 = vsyncpa [#allocation8], 1 }
 0x621   :  { %501 = vsyncpa [#allocation8 + $0x1], 1 }

</bundles_post_ra>
